<compile_context>
chip_gen: v6e
topology: v6e:2x2x1
jax: 0.10.0
libtpu: 0.0.40
codegen_flags: <defaults>
</compile_context>

<pallas_src>
import functools

import jax
import jax.numpy as jnp
from jax import lax
from jax.experimental import pallas as pl
from jax.experimental.pallas import tpu as pltpu

_LANES = 128


# --------------------------------------------------------------------------- sizing helpers
def _pad_up(v, m):
    return ((v + m - 1) // m) * m


def _vmem_capacity_per_core():
    try:
        cap = getattr(pltpu.get_tpu_info(), "vmem_capacity_bytes", None)
        if cap:
            return int(cap)
    except Exception:
        pass
    try:
        kind = jax.devices()[0].device_kind.lower()
        if "v7" in kind or "7x" in kind:
            return 64 << 20
        return 128 << 20          # v4 / v5e / v5p / v6e
    except Exception:
        return 64 << 20           # conservative default (v7x per-TensorCore VMEM)


def _gen_budgets():
    """(pipeline budget, tile lane target, vmem_limit cap) — generation aware."""
    if _vmem_capacity_per_core() >= (120 << 20):      # 128 MiB parts: v5e / v6e
        return 48 << 20, 8192, 96 << 20
    return 20 << 20, 2048, 44 << 20                   # v7x (64 MiB per core)


def _pick_tile(hw, cin, cout4, in_itemsize, out_itemsize, target, budget):
    """Largest multiple-of-128 tile (<= target) dividing hw whose pipelined footprint fits."""
    cin_p = max(8, _pad_up(cin, 8))
    cout4_p = max(8, _pad_up(cout4, 8))
    # per-lane bytes: double-buffered x + out tiles, plus f32 compute temporaries.
    per_lane = 2 * (cin_p * in_itemsize + cout4_p * out_itemsize) + 2 * cout4_p * 4
    if hw % _LANES != 0:
        if per_lane * hw > budget:
            raise ValueError(
                f"H*W={hw} is not a multiple of 128 and a single ({cin},{hw}) block does not "
                f"fit the VMEM budget; pad the spatial dims to a multiple of 128.")
        return hw                  # block must equal the full pixel dim
    t = min(hw, max(_LANES, target - target % _LANES))
    while t > _LANES and (hw % t != 0 or per_lane * t > budget):
        t -= _LANES
    return t


def _vmem_limit_bytes(cin, cout4, t, in_itemsize, out_itemsize, cap):
    cin_s = max(8, _pad_up(cin, 8))              # x block: Cin on sublanes
    cin_l = max(_LANES, _pad_up(cin, _LANES))    # wT block: Cin on lanes (fixes Cin>128 case)
    cout4_s = max(8, _pad_up(cout4, 8))
    t_l = max(_LANES, _pad_up(t, _LANES))
    est = (2 * cin_s * t_l * in_itemsize         # double-buffered x tile
           + 2 * cout4_s * t_l * out_itemsize    # double-buffered output tile (apply pass)
           + 2 * cout4_s * cin_l * in_itemsize   # double-buffered wT (constant index_map)
           + 2 * cout4_s * t_l * 4               # f32 matmul result + epilogue temporary
           + 6 * cout4_s * _LANES * 4            # scale/shift + mean/M2 accumulators
           + (1 << 20))                          # slack
    return int(min(cap, max(8 << 20, 2 * est)))


# --------------------------------------------------------------------------------- kernels
def _stats_kernel_lanes(x_ref, wt_ref, mean_ref, m2_ref, *, chunks):
    """Pass 1 (lane-partitioned Welford): per-image, per-(c,kk)-row, per-lane running
    mean / M2 of y = wT @ x.  No cross-lane XLU reduce; all merges are VPU adds."""
    @pl.when(pl.program_id(1) == 0)
    def _init():
        mean_ref[...] = jnp.zeros_like(mean_ref)
        m2_ref[...] = jnp.zeros_like(m2_ref)

    y = jnp.dot(wt_ref[...], x_ref[0], preferred_element_type=jnp.float32)   # (4C, T) f32

    # Within-tile Welford over the T//128 lane-groups (static counts -> constant scales).
    t_mean = y[:, 0:_LANES]
    t_m2 = jnp.zeros_like(t_mean)
    for j in range(1, chunks):
        yj = y[:, j * _LANES:(j + 1) * _LANES]
        delta = yj - t_mean
        t_mean = t_mean + delta * (1.0 / (j + 1.0))
        t_m2 = t_m2 + delta * (yj - t_mean)

    # Chan merge of this tile into the per-image accumulator (count nb per lane).
    nb = float(chunks)
    na = pl.program_id(1).astype(jnp.float32) * nb
    frac = nb / (na + nb)
    delta = t_mean - mean_ref[0]
    mean_ref[0] = mean_ref[0] + delta * frac
    m2_ref[0] = m2_ref[0] + t_m2 + (delta * delta) * (na * frac)


def _stats_kernel_flat(x_ref, wt_ref, mean_ref, m2_ref, *, tile_cols):
    """Pass 1 fallback for tiles whose width is not a multiple of 128 (cross-lane reduce)."""
    @pl.when(pl.program_id(1) == 0)
    def _init():
        mean_ref[...] = jnp.zeros_like(mean_ref)
        m2_ref[...] = jnp.zeros_like(m2_ref)

    y = jnp.dot(wt_ref[...], x_ref[0], preferred_element_type=jnp.float32)   # (4C, T)
    nb = float(tile_cols)
    t_mean = jnp.sum(y, axis=1, keepdims=True) * (1.0 / nb)                  # (4C, 1)
    d = y - t_mean
    t_m2 = jnp.sum(d * d, axis=1, keepdims=True)

    na = pl.program_id(1).astype(jnp.float32) * nb
    frac = nb / (na + nb)
    delta = t_mean - mean_ref[0]
    mean_ref[0] = mean_ref[0] + delta * frac
    m2_ref[0] = m2_ref[0] + t_m2 + (delta * delta) * (na * frac)


def _apply_kernel(x_ref, wt_ref, scale_ref, shift_ref, o_ref):
    """Pass 2: recompute y = wT @ x and apply fused BN affine + ReLU (lane-dense store)."""
    y = jnp.dot(wt_ref[...], x_ref[0], preferred_element_type=jnp.float32)   # (4C, T) f32
    o_ref[0] = jnp.maximum(y * scale_ref[...] + shift_ref[...], 0.0).astype(o_ref.dtype)


# ---------------------------------------------------------------------------- core wrapper
def _conv_t_bn_relu_split(x3, w, gamma, beta, *, eps, matmul_dtype, out_dtype,
                          tile_target=None):
    """Core op on the channel-major 'split' layout.

    x3: (N, Cin, P) — pixel axis in ANY fixed order (permutation-invariant for this op).
    Returns (N, Cout, 4*P) in the same pixel order with q = (kh*2+kw)*P + p.  Because the
    wT rows are c-major, this is a pure reshape of the kernel output — no relayout between
    chained layers."""
    N, Cin, P = x3.shape
    Cout = w.shape[1]
    C4 = 4 * Cout
    in_itemsize = jnp.dtype(matmul_dtype).itemsize
    out_itemsize = jnp.dtype(out_dtype).itemsize

    budget, auto_target, vmem_cap = _gen_budgets()
    target = auto_target if tile_target is None else tile_target
    T = _pick_tile(P, Cin, C4, in_itemsize, out_itemsize, target, budget)
    grid = (N, P // T)
    vmem_limit = _vmem_limit_bytes(Cin, C4, T, in_itemsize, out_itemsize, vmem_cap)

    if x3.dtype != matmul_dtype:
        x3 = x3.astype(matmul_dtype)           # ideally the caller already hands us bf16
    # wT rows c-major: row r = c*4 + kh*2 + kw, wt[r, i] = w[i, c, kh, kw].
    wt = jnp.transpose(w, (1, 2, 3, 0)).reshape(C4, Cin).astype(matmul_dtype)

    x_spec = pl.BlockSpec((1, Cin, T), lambda n, j: (n, 0, j))
    wt_spec = pl.BlockSpec((C4, Cin), lambda n, j: (0, 0))
    vec_spec = pl.BlockSpec((C4, 1), lambda n, j: (0, 0))

    lane_stats = (T % _LANES == 0)
    L = _LANES if lane_stats else 1
    if lane_stats:
        stats_kernel = functools.partial(_stats_kernel_lanes, chunks=T // _LANES)
    else:
        stats_kernel = functools.partial(_stats_kernel_flat, tile_cols=T)

    # ---- Pass 1: per-image partial Welford stats ("parallel" n -> both v7x cores busy) ----
    mean_p, m2_p = pl.pallas_call(
        stats_kernel,
        out_shape=(jax.ShapeDtypeStruct((N, C4, L), jnp.float32),
                   jax.ShapeDtypeStruct((N, C4, L), jnp.float32)),
        grid_spec=pltpu.PrefetchScalarGridSpec(
            num_scalar_prefetch=0, grid=grid,
            in_specs=[x_spec, wt_spec],
            out_specs=[pl.BlockSpec((1, C4, L), lambda n, j: (n, 0, 0)),
                       pl.BlockSpec((1, C4, L), lambda n, j: (n, 0, 0))]),
        compiler_params=pltpu.CompilerParams(
            dimension_semantics=("parallel", "arbitrary"),
            vmem_limit_bytes=vmem_limit),
    )(x3, wt)

    # ---- Finalize: pool the equal-count partials into per-channel BN scale/shift ----------
    npc = float(P // L)                                       # elements per partial cell
    mr = mean_p.reshape(N, Cout, 4, L)                        # rows are c-major
    m2r = m2_p.reshape(N, Cout, 4, L)
    mu = jnp.mean(mr, axis=(0, 2, 3))                         # per-channel batch mean
    dev = mr - mu[None, :, None, None]
    m2_c = jnp.sum(m2r + npc * dev * dev, axis=(0, 2, 3))     # pooled sum of squared devs
    var = m2_c / (4.0 * N * P)                                # biased, as BN normalizes with
    inv = lax.rsqrt(var + eps)
    scale_c = gamma.astype(jnp.float32) * inv
    shift_c = beta.astype(jnp.float32) - mu * scale_c
    scale4 = jnp.repeat(scale_c, 4)[:, None]                  # (4Cout, 1), c-major rows
    shift4 = jnp.repeat(shift_c, 4)[:, None]

    # ---- Pass 2: recompute the cheap matmul, fused BN + ReLU, lane-dense output -----------
    y = pl.pallas_call(
        _apply_kernel,
        out_shape=jax.ShapeDtypeStruct((N, C4, P), out_dtype),
        grid_spec=pltpu.PrefetchScalarGridSpec(
            num_scalar_prefetch=0, grid=grid,
            in_specs=[x_spec, wt_spec, vec_spec, vec_spec],
            out_specs=pl.BlockSpec((1, C4, T), lambda n, j: (n, 0, j))),
        compiler_params=pltpu.CompilerParams(
            dimension_semantics=("parallel", "parallel"),
            vmem_limit_bytes=vmem_limit),
    )(x3, wt, scale4, shift4)

    return y.reshape(N, Cout, 4 * P)                          # pure reshape (c-major rows)


def _depth_to_space(y_split, H0, W0, n_layers):
    """(N, C, 4^L*H0*W0) split layout -> (N, C, 2^L*H0, 2^L*W0) NCHW.
    One XLA transpose for the whole chain (the per-layer pixel-shuffle of rev 2 is gone)."""
    N, C = y_split.shape[:2]
    L = n_layers
    if L == 0:
        return y_split.reshape(N, C, H0, W0)
    y = y_split.reshape((N, C) + (2, 2) * L + (H0, W0))
    # axes: n, c, kh_L, kw_L, ..., kh_1, kw_1, h0, w0
    perm = ([0, 1, 2 + 2 * L] + [2 + 2 * (L - l) for l in range(1, L + 1)]
            + [3 + 2 * L] + [3 + 2 * (L - l) for l in range(1, L + 1)])
    y = jnp.transpose(y, perm)                                # (n, c, h0, kh1..khL, w0, kw1..kwL)
    return y.reshape(N, C, (2 ** L) * H0, (2 ** L) * W0)


# --------------------------------------------------------------------------- public wrappers
def conv_t_bn_relu(x, w, b, gamma, beta, *, eps=1e-5, matmul_dtype=jnp.bfloat16,
                   out_dtype=None, tile_target=None):
    """ConvTranspose2d(k=2,s=2,p=0) + BatchNorm2d (training-mode batch stats) + ReLU.

    x: (N, Cin, H, W) NCHW; w: (Cin, Cout, 2, 2) PyTorch ConvTranspose2d weight;
    b: (Cout,) conv bias (a per-channel constant shifts the batch mean identically, so it
    cancels exactly in training-mode BN and is dropped); gamma/beta: (Cout,) BN affine.
    Returns (N, Cout, 2H, 2W) in out_dtype (defaults to matmul_dtype: bf16 end-to-end)."""
    del b
    out_dtype = matmul_dtype if out_dtype is None else out_dtype
    N, Cin, H, W = x.shape
    y = _conv_t_bn_relu_split(x.reshape(N, Cin, H * W), w, gamma, beta, eps=eps,
                              matmul_dtype=matmul_dtype, out_dtype=out_dtype,
                              tile_target=tile_target)
    return _depth_to_space(y, H, W, 1)


def up_convt(x, layer_params, *, eps=1e-5, matmul_dtype=jnp.bfloat16, out_dtype=None,
             tile_target=None):
    """DEM.UpConvt: a chain of ConvTBNRelu blocks.  Intermediate layers stay in the permuted
    channel-major split layout (zero relayout between layers, bf16 hand-off); a single
    depth-to-space transpose converts to NCHW at the end."""
    out_dtype = matmul_dtype if out_dtype is None else out_dtype
    N, Cin, H, W = x.shape
    y = x.reshape(N, Cin, H * W)
    n = len(layer_params)
    for i, (w, _b, gamma, beta) in enumerate(layer_params):   # _b cancels in BN (see above)
        dt = out_dtype if i == n - 1 else matmul_dtype
        y = _conv_t_bn_relu_split(y, w, gamma, beta, eps=eps, matmul_dtype=matmul_dtype,
                                  out_dtype=dt, tile_target=tile_target)
    return _depth_to_space(y, H, W, n)


# -------------------------------------------------------------------------------- reference
def reference(x, w, b, gamma, beta, eps=1e-5):
    """Pure-JAX reference (independent code path) matching PyTorch semantics
    (including the conv bias, which the kernel provably drops)."""
    N, Cin, H, W = x.shape
    Cout = w.shape[1]
    y = jnp.einsum('nihw,iojk->nohjwk', x, w).reshape(N, Cout, 2 * H, 2 * W)
    y = y + b[None, :, None, None]
    mean = y.mean(axis=(0, 2, 3), keepdims=True)
    var = y.var(axis=(0, 2, 3), keepdims=True)     # biased, as BN uses for normalization
    yh = (y - mean) / jnp.sqrt(var + eps)
    return jnp.maximum(gamma[None, :, None, None] * yh + beta[None, :, None, None], 0.0)


if __name__ == "__main__":
    key = jax.random.PRNGKey(0)
    ks = jax.random.split(key, 11)
    N, Cin, Cout, H, W = 2, 4, 8, 16, 16
    x = jax.random.normal(ks[0], (N, Cin, H, W), jnp.float32)
    w1 = jax.random.normal(ks[1], (Cin, Cout, 2, 2), jnp.float32) * 0.25
    b1 = jax.random.normal(ks[2], (Cout,), jnp.float32) * 0.1
    g1 = 1.0 + 0.1 * jax.random.normal(ks[3], (Cout,), jnp.float32)
    be1 = 0.1 * jax.random.normal(ks[4], (Cout,), jnp.float32)
    w2 = jax.random.normal(ks[5], (Cout, Cout, 2, 2), jnp.float32) * 0.2
    b2 = jax.random.normal(ks[6], (Cout,), jnp.float32) * 0.1
    g2 = 1.0 + 0.1 * jax.random.normal(ks[7], (Cout,), jnp.float32)
    be2 = 0.1 * jax.random.normal(ks[8], (Cout,), jnp.float32)

    ref1 = reference(x, w1, b1, g1, be1)

    # 1) f32 path: tight agreement with the independent reference.
    f32_fn = jax.jit(functools.partial(conv_t_bn_relu,
                                       matmul_dtype=jnp.float32, out_dtype=jnp.float32))
    out32 = jax.block_until_ready(f32_fn(x, w1, b1, g1, be1))
    assert out32.shape == (N, Cout, 2 * H, 2 * W), out32.shape
    assert jnp.allclose(out32, ref1, atol=2e-3, rtol=2e-3), \
        float(jnp.max(jnp.abs(out32 - ref1)))

    # 2) Default performance path (bf16 in / bf16 out): looser tolerance.
    bf_fn = jax.jit(conv_t_bn_relu)
    out_bf = jax.block_until_ready(bf_fn(x, w1, b1, g1, be1))
    assert out_bf.dtype == jnp.bfloat16, out_bf.dtype
    assert jnp.allclose(out_bf.astype(jnp.float32), ref1, atol=0.15, rtol=0.05), \
        float(jnp.max(jnp.abs(out_bf.astype(jnp.float32) - ref1)))

    # 3) Two-block UpConvt chain in the fused split layout (one final depth-to-space).
    chain_fn = jax.jit(functools.partial(up_convt, matmul_dtype=jnp.float32,
                                         out_dtype=jnp.float32))
    out_chain = jax.block_until_ready(chain_fn(x, [(w1, b1, g1, be1), (w2, b2, g2, be2)]))
    ref2 = reference(ref1, w2, b2, g2, be2)
    assert out_chain.shape == (N, Cout, 4 * H, 4 * W), out_chain.shape
    assert jnp.allclose(out_chain, ref2, atol=5e-3, rtol=5e-3), \
        float(jnp.max(jnp.abs(out_chain - ref2)))

    # 4) Non-128-aligned pixel count (DEM's 8x8 diffusion reshape) exercises the fallback
    #    stats kernel.
    xs = jax.random.normal(ks[9], (N, Cin, 8, 8), jnp.float32)
    small_fn = jax.jit(functools.partial(conv_t_bn_relu, matmul_dtype=jnp.float32,
                                         out_dtype=jnp.float32))
    outs = jax.block_until_ready(small_fn(xs, w1, b1, g1, be1))
    refs = reference(xs, w1, b1, g1, be1)
    assert outs.shape == (N, Cout, 16, 16), outs.shape
    assert jnp.allclose(outs, refs, atol=2e-3, rtol=2e-3), \
        float(jnp.max(jnp.abs(outs - refs)))

    print("KERNEL_OK")
</pallas_src>

<mosaic_0001>
module attributes {stable_mosaic.version = 11 : i64} {
  func.func @_stats_kernel_lanes(%arg0: i32, %arg1: i32, %arg2: memref<1x4x256xf32, #tpu.memory_space<vmem>>, %arg3: memref<32x4xf32, #tpu.memory_space<vmem>>, %arg4: memref<1x32x128xf32, #tpu.memory_space<vmem>>, %arg5: memref<1x32x128xf32, #tpu.memory_space<vmem>>) attributes {dimension_semantics = [#tpu.dimension_semantics<parallel>, #tpu.dimension_semantics<arbitrary>], iteration_bounds = array<i64: 2, 1>, scalar_prefetch = 0 : i64, scratch_operands = 0 : i64, tpu.core_type = #tpu.core_type<tc>, window_params = [{transform_indices = @transform_0, window_bounds = array<i64: 1, 4, 256>}, {pipeline_mode = #tpu.pipeline_mode<synchronous>, transform_indices = @transform_1, window_bounds = array<i64: 32, 4>}, {transform_indices = @transform_2, window_bounds = array<i64: 1, 32, 128>}, {transform_indices = @transform_3, window_bounds = array<i64: 1, 32, 128>}]} {
    %c0_i32 = arith.constant 0 : i32
    %0 = arith.cmpi eq, %arg1, %c0_i32 : i32
    %1 = arith.extui %0 : i1 to i32
    %c0_i32_0 = arith.constant 0 : i32
    %2 = arith.cmpi ne, %1, %c0_i32_0 : i32
    scf.if %2 {
      %cst_25 = arith.constant 0.000000e+00 : f32
      %43 = vector.broadcast %cst_25 : f32 to vector<1x32x128xf32>
      %c0_26 = arith.constant 0 : index
      %c0_27 = arith.constant 0 : index
      %c0_28 = arith.constant 0 : index
      %44 = vector.load %arg4[%c0_26, %c0_27, %c0_28] : memref<1x32x128xf32, #tpu.memory_space<vmem>>, vector<1x32x128xf32>
      tpu.vector_store %arg4[%c0_26, %c0_27, %c0_28], %43 {strides = array<i32>} : memref<1x32x128xf32, #tpu.memory_space<vmem>>, vector<1x32x128xf32>,
      %cst_29 = arith.constant 0.000000e+00 : f32
      %45 = vector.broadcast %cst_29 : f32 to vector<1x32x128xf32>
      %c0_30 = arith.constant 0 : index
      %c0_31 = arith.constant 0 : index
      %c0_32 = arith.constant 0 : index
      %46 = vector.load %arg5[%c0_30, %c0_31, %c0_32] : memref<1x32x128xf32, #tpu.memory_space<vmem>>, vector<1x32x128xf32>
      tpu.vector_store %arg5[%c0_30, %c0_31, %c0_32], %45 {strides = array<i32>} : memref<1x32x128xf32, #tpu.memory_space<vmem>>, vector<1x32x128xf32>,
    } else {
    }
    %c0 = arith.constant 0 : index
    %c0_1 = arith.constant 0 : index
    %3 = vector.load %arg3[%c0, %c0_1] : memref<32x4xf32, #tpu.memory_space<vmem>>, vector<32x4xf32>
    %c0_2 = arith.constant 0 : index
    %c0_3 = arith.constant 0 : index
    %c0_4 = arith.constant 0 : index
    %4 = vector.load %arg2[%c0_2, %c0_3, %c0_4] : memref<1x4x256xf32, #tpu.memory_space<vmem>>, vector<1x4x256xf32>
    %5 = vector.shape_cast %4 : vector<1x4x256xf32> to vector<4x256xf32>
    %cst = arith.constant dense<0.000000e+00> : vector<32x256xf32>
    %6 = tpu.matmul %3, %5, %cst {dimension_numbers = #tpu.dot_dimension_numbers<[1], [0], [0], [1], [0, 0, 1, 1], [], []>} : vector<32x4xf32>, vector<4x256xf32>, vector<32x256xf32> -> vector<32x256xf32>
    %7 = vector.extract_strided_slice %6 {offsets = [0, 0], sizes = [32, 128], strides = [1, 1]} : vector<32x256xf32> to vector<32x128xf32>
    %cst_5 = arith.constant 0.000000e+00 : f32
    %8 = vector.broadcast %cst_5 : f32 to vector<32x128xf32>
    %9 = vector.extract_strided_slice %6 {offsets = [0, 128], sizes = [32, 128], strides = [1, 1]} : vector<32x256xf32> to vector<32x128xf32>
    %10 = arith.subf %9, %7 : vector<32x128xf32>
    %cst_6 = arith.constant 5.000000e-01 : f32
    %11 = vector.broadcast %cst_6 : f32 to vector<32x128xf32>
    %12 = arith.mulf %10, %11 : vector<32x128xf32>
    %13 = arith.addf %7, %12 : vector<32x128xf32>
    %14 = arith.subf %9, %13 : vector<32x128xf32>
    %15 = arith.mulf %10, %14 : vector<32x128xf32>
    %16 = arith.addf %8, %15 : vector<32x128xf32>
    %17 = arith.sitofp %arg1 : i32 to f32
    %cst_7 = arith.constant 2.000000e+00 : f32
    %18 = arith.mulf %17, %cst_7 : f32
    %cst_8 = arith.constant 2.000000e+00 : f32
    %19 = arith.addf %18, %cst_8 : f32
    %cst_9 = arith.constant 2.000000e+00 : f32
    %20 = arith.divf %cst_9, %19 : f32
    %c0_10 = arith.constant 0 : index
    %c0_11 = arith.constant 0 : index
    %c0_12 = arith.constant 0 : index
    %21 = vector.load %arg4[%c0_10, %c0_11, %c0_12] : memref<1x32x128xf32, #tpu.memory_space<vmem>>, vector<1x32x128xf32>
    %22 = vector.shape_cast %21 : vector<1x32x128xf32> to vector<32x128xf32>
    %23 = arith.subf %13, %22 : vector<32x128xf32>
    %c0_13 = arith.constant 0 : index
    %c0_14 = arith.constant 0 : index
    %c0_15 = arith.constant 0 : index
    %24 = vector.load %arg4[%c0_13, %c0_14, %c0_15] : memref<1x32x128xf32, #tpu.memory_space<vmem>>, vector<1x32x128xf32>
    %25 = vector.shape_cast %24 : vector<1x32x128xf32> to vector<32x128xf32>
    %26 = vector.broadcast %20 : f32 to vector<32x128xf32>
    %27 = arith.mulf %23, %26 : vector<32x128xf32>
    %28 = arith.addf %25, %27 : vector<32x128xf32>
    %c0_16 = arith.constant 0 : index
    %c0_17 = arith.constant 0 : index
    %c0_18 = arith.constant 0 : index
    %29 = vector.load %arg4[%c0_16, %c0_17, %c0_18] : memref<1x32x128xf32, #tpu.memory_space<vmem>>, vector<1x32x128xf32>
    %30 = vector.shape_cast %29 : vector<1x32x128xf32> to vector<32x128xf32>
    %31 = vector.shape_cast %28 : vector<32x128xf32> to vector<1x32x128xf32>
    tpu.vector_store %arg4[%c0_16, %c0_17, %c0_18], %31 {strides = array<i32>} : memref<1x32x128xf32, #tpu.memory_space<vmem>>, vector<1x32x128xf32>,
    %c0_19 = arith.constant 0 : index
    %c0_20 = arith.constant 0 : index
    %c0_21 = arith.constant 0 : index
    %32 = vector.load %arg5[%c0_19, %c0_20, %c0_21] : memref<1x32x128xf32, #tpu.memory_space<vmem>>, vector<1x32x128xf32>
    %33 = vector.shape_cast %32 : vector<1x32x128xf32> to vector<32x128xf32>
    %34 = arith.addf %33, %16 : vector<32x128xf32>
    %35 = arith.mulf %23, %23 : vector<32x128xf32>
    %36 = arith.mulf %18, %20 : f32
    %37 = vector.broadcast %36 : f32 to vector<32x128xf32>
    %38 = arith.mulf %35, %37 : vector<32x128xf32>
    %39 = arith.addf %34, %38 : vector<32x128xf32>
    %c0_22 = arith.constant 0 : index
    %c0_23 = arith.constant 0 : index
    %c0_24 = arith.constant 0 : index
    %40 = vector.load %arg5[%c0_22, %c0_23, %c0_24] : memref<1x32x128xf32, #tpu.memory_space<vmem>>, vector<1x32x128xf32>
    %41 = vector.shape_cast %40 : vector<1x32x128xf32> to vector<32x128xf32>
    %42 = vector.shape_cast %39 : vector<32x128xf32> to vector<1x32x128xf32>
    tpu.vector_store %arg5[%c0_22, %c0_23, %c0_24], %42 {strides = array<i32>} : memref<1x32x128xf32, #tpu.memory_space<vmem>>, vector<1x32x128xf32>,
    return
  }
  func.func @transform_0(%arg0: i32, %arg1: i32) -> (i32, i32, i32) {
    %c0_i32 = arith.constant 0 : i32
    %c0_i32_0 = arith.constant 0 : i32
    return %arg0, %c0_i32, %arg1 : i32, i32, i32
  }
  func.func @transform_1(%arg0: i32, %arg1: i32) -> (i32, i32) {
    %c0_i32 = arith.constant 0 : i32
    %c0_i32_0 = arith.constant 0 : i32
    %c0_i32_1 = arith.constant 0 : i32
    return %c0_i32, %c0_i32_0 : i32, i32
  }
  func.func @transform_2(%arg0: i32, %arg1: i32) -> (i32, i32, i32) {
    %c0_i32 = arith.constant 0 : i32
    %c0_i32_0 = arith.constant 0 : i32
    %c0_i32_1 = arith.constant 0 : i32
    return %arg0, %c0_i32, %c0_i32_0 : i32, i32, i32
  }
  func.func @transform_3(%arg0: i32, %arg1: i32) -> (i32, i32, i32) {
    %c0_i32 = arith.constant 0 : i32
    %c0_i32_0 = arith.constant 0 : i32
    %c0_i32_1 = arith.constant 0 : i32
    return %arg0, %c0_i32, %c0_i32_0 : i32, i32, i32
  }
}

module attributes {stable_mosaic.version = 11 : i64} {
  func.func @_apply_kernel(%arg0: i32, %arg1: i32, %arg2: memref<1x4x256xf32, #tpu.memory_space<vmem>>, %arg3: memref<32x4xf32, #tpu.memory_space<vmem>>, %arg4: memref<32x1xf32, #tpu.memory_space<vmem>>, %arg5: memref<32x1xf32, #tpu.memory_space<vmem>>, %arg6: memref<1x32x256xf32, #tpu.memory_space<vmem>>) attributes {dimension_semantics = [#tpu.dimension_semantics<parallel>, #tpu.dimension_semantics<parallel>], iteration_bounds = array<i64: 2, 1>, scalar_prefetch = 0 : i64, scratch_operands = 0 : i64, tpu.core_type = #tpu.core_type<tc>, window_params = [{transform_indices = @transform_0, window_bounds = array<i64: 1, 4, 256>}, {pipeline_mode = #tpu.pipeline_mode<synchronous>, transform_indices = @transform_1, window_bounds = array<i64: 32, 4>}, {pipeline_mode = #tpu.pipeline_mode<synchronous>, transform_indices = @transform_2, window_bounds = array<i64: 32, 1>}, {pipeline_mode = #tpu.pipeline_mode<synchronous>, transform_indices = @transform_3, window_bounds = array<i64: 32, 1>}, {transform_indices = @transform_4, window_bounds = array<i64: 1, 32, 256>}]} {
    %c0 = arith.constant 0 : index
    %c0_0 = arith.constant 0 : index
    %0 = vector.load %arg3[%c0, %c0_0] : memref<32x4xf32, #tpu.memory_space<vmem>>, vector<32x4xf32>
    %c0_1 = arith.constant 0 : index
    %c0_2 = arith.constant 0 : index
    %c0_3 = arith.constant 0 : index
    %1 = vector.load %arg2[%c0_1, %c0_2, %c0_3] : memref<1x4x256xf32, #tpu.memory_space<vmem>>, vector<1x4x256xf32>
    %2 = vector.shape_cast %1 : vector<1x4x256xf32> to vector<4x256xf32>
    %cst = arith.constant dense<0.000000e+00> : vector<32x256xf32>
    %3 = tpu.matmul %0, %2, %cst {dimension_numbers = #tpu.dot_dimension_numbers<[1], [0], [0], [1], [0, 0, 1, 1], [], []>} : vector<32x4xf32>, vector<4x256xf32>, vector<32x256xf32> -> vector<32x256xf32>
    %c0_4 = arith.constant 0 : index
    %c0_5 = arith.constant 0 : index
    %4 = vector.load %arg4[%c0_4, %c0_5] : memref<32x1xf32, #tpu.memory_space<vmem>>, vector<32x1xf32>
    %5 = vector.broadcast %4 : vector<32x1xf32> to vector<32x256xf32>
    %6 = arith.mulf %3, %5 : vector<32x256xf32>
    %c0_6 = arith.constant 0 : index
    %c0_7 = arith.constant 0 : index
    %7 = vector.load %arg5[%c0_6, %c0_7] : memref<32x1xf32, #tpu.memory_space<vmem>>, vector<32x1xf32>
    %8 = vector.broadcast %7 : vector<32x1xf32> to vector<32x256xf32>
    %9 = arith.addf %6, %8 : vector<32x256xf32>
    %cst_8 = arith.constant 0.000000e+00 : f32
    %10 = vector.broadcast %cst_8 : f32 to vector<32x256xf32>
    %11 = arith.maximumf %9, %10 : vector<32x256xf32>
    %c0_9 = arith.constant 0 : index
    %c0_10 = arith.constant 0 : index
    %c0_11 = arith.constant 0 : index
    %12 = vector.load %arg6[%c0_9, %c0_10, %c0_11] : memref<1x32x256xf32, #tpu.memory_space<vmem>>, vector<1x32x256xf32>
    %13 = vector.shape_cast %12 : vector<1x32x256xf32> to vector<32x256xf32>
    %14 = vector.shape_cast %11 : vector<32x256xf32> to vector<1x32x256xf32>
    tpu.vector_store %arg6[%c0_9, %c0_10, %c0_11], %14 {strides = array<i32>} : memref<1x32x256xf32, #tpu.memory_space<vmem>>, vector<1x32x256xf32>,
    return
  }
  func.func @transform_0(%arg0: i32, %arg1: i32) -> (i32, i32, i32) {
    %c0_i32 = arith.constant 0 : i32
    %c0_i32_0 = arith.constant 0 : i32
    return %arg0, %c0_i32, %arg1 : i32, i32, i32
  }
  func.func @transform_1(%arg0: i32, %arg1: i32) -> (i32, i32) {
    %c0_i32 = arith.constant 0 : i32
    %c0_i32_0 = arith.constant 0 : i32
    %c0_i32_1 = arith.constant 0 : i32
    return %c0_i32, %c0_i32_0 : i32, i32
  }
  func.func @transform_2(%arg0: i32, %arg1: i32) -> (i32, i32) {
    %c0_i32 = arith.constant 0 : i32
    %c0_i32_0 = arith.constant 0 : i32
    %c0_i32_1 = arith.constant 0 : i32
    return %c0_i32, %c0_i32_0 : i32, i32
  }
  func.func @transform_3(%arg0: i32, %arg1: i32) -> (i32, i32) {
    %c0_i32 = arith.constant 0 : i32
    %c0_i32_0 = arith.constant 0 : i32
    %c0_i32_1 = arith.constant 0 : i32
    return %c0_i32, %c0_i32_0 : i32, i32
  }
  func.func @transform_4(%arg0: i32, %arg1: i32) -> (i32, i32, i32) {
    %c0_i32 = arith.constant 0 : i32
    %c0_i32_0 = arith.constant 0 : i32
    return %arg0, %c0_i32, %arg1 : i32, i32, i32
  }
}

</mosaic_0001>

<bundles_post_ra>
// kernel: conv_t_bn_relu.3
= control target key start
LH: loop header
LB: loop body
LE: loop exit
PB: predicated region body
PF: predicated region fallthrough
CT: control target
= control target key end

     0   :  { %s619_s15 = smov 0   ;;  %s621_s16 = smov 0   ;;  %s706_s0 = inlined_call_operand.vmem [shape: f32[2,4,256], index: 0, kind: input, shape index: {}]   ;;  %s707_s1 = inlined_call_operand.vmem [shape: f32[32,4], index: 1, kind: input, shape index: {}]   ;;  %s708_s2 = inlined_call_operand.vmem [shape: f32[32,1], index: 2, kind: input, shape index: {}]   ;;  %s709_s3 = inlined_call_operand.vmem [shape: f32[32,1], index: 3, kind: input, shape index: {}]   ;;  %s710_s4 = inlined_call_operand.vmem [shape: f32[2,32,256], index: 4, kind: output, shape index: {}]  }
   0x1   :  { %s623_s17 = smov 0  }
   0x2 LB: > { %s26_s18 = sadd.s32 1, %s586_s16  ;;  %p522_p0 = scmp.ge.s32.totalorder %s590_s17, 1  ;;  %s590_s17 = sphi %s623_s17, %s14_s17   ;;  %s586_s16 = sphi %s621_s16, %s712_s16   ;;  %s582_s15 = sphi %s619_s15, %s711_s15  }
   0x3   : > { %p28_p1 = scmp.ge.s32.totalorder %s26_s18, 2  ;;  %p183_p2 = scmp.lt.s32.totalorder %s590_s17, 3 }
   0x5   : > { %s714_s18 = smov (%p28_p1, %s26_s18), 0  ;;  %p184_p3 = pnand %p522_p0, %p183_p2 }
   0x6   : > { %p218_p4 = scmp.lt.s32.totalorder (!%p184_p3), %s582_s15, 1 }
   0x7   : > { %187 = sbr.rel (%p184_p3) target bundleno = 227 (0xe3), region = 36 }
   0xc   : > { %v592_v0 = vmov 0.0   ;;  %v353_v1 = vld [vmem:[%s708_s2 + $0x10] sm:$0xff]  ;;  %s716_s15 = smov (!%p218_p4, %s582_s15), 1  ;;  %v593_v2 = vmov 0   ;;  %v351_v3 = vld [vmem:[%s708_s2] sm:$0xff]  ;;  %v354_v4 = vld [vmem:[%s708_s2 + $0x18] sm:$0xff] }
   0xd   : > { %326 = vmatprep.mubr.f32.mxu0 %v592_v0  ;;  %338 = vmatprep.mubr.f32.mxu1 %v592_v0  ;;  %s535_s23 = sshll.u32 %s716_s15, 3  ;;  %v352_v5 = vld [vmem:[%s708_s2 + $0x8] sm:$0xff]  ;;  %vm257_vm0 = vcmask 1043456   ;;  %v237_v8 = vld [vmem:[%s707_s1] sm:$0xff]  ;;  %vm244_vm1 = vcmask 31744   ;;  %v239_v9 = vld [vmem:[%s707_s1 + $0x10] sm:$0xff] }
   0xe   : > { %566 = vset.pattern.permute.xlu1 %v593_v2  ;;  %565 = vset.pattern.permute.xlu0 %v593_v2  ;;  %s225_s30 = scalar_lea.vmem %s706_s0, %s535_s23  ;;  %v384_v10 = vld [vmem:[%s709_s3 + $0x8] sm:$0xff]  ;;  %v383_v11 = vld [vmem:[%s709_s3] sm:$0xff]  ;;  %v240_v13 = vld [vmem:[%s707_s1 + $0x18] sm:$0xff]  ;;  %s536_s25 = sshll.u32 %s716_s15, 6 }
   0xf   : > { %367 = vperm.xlu1 %566, %v353_v1   ;;  %357 = vperm.xlu0 %565, %v351_v3   ;;  %v241_v6 = vld [vmem:[%s225_s30] sm:$0xff]  ;;  %v238_v12 = vld [vmem:[%s707_s1 + $0x8] sm:$0xff]  ;;  %v386_v14 = vld [vmem:[%s709_s3 + $0x18] sm:$0xff]  ;;  %s687_s28 = scalar_lea.vmem %s710_s4, %s536_s25 }
  0x10   : > { %v243_v7 = vcombine.high %v241_v6, %v241_v6  ;;  %v385_v15 = vld [vmem:[%s709_s3 + $0x10] sm:$0xff] }
  0x12   : > { %527 = vmatprep.subr.msk.mxu0 %vm257_vm0, %v243_v7  ;;  %537 = vmatprep.subr.msk.mxu1 %vm257_vm0, %v243_v7 }
  0x13   : > { %372 = vperm.xlu1 %566, %v354_v4   ;;  %362 = vperm.xlu0 %565, %v352_v5  }
  0x14   : > { %528 = vmatpush1.msk.msra.mxu0 %vm257_vm0, %v241_v6  ;;  %538 = vmatpush1.msk.msra.mxu1 %vm257_vm0, %v241_v6 }
  0x15   : > { %529 = vmatmul.mubr.msk.f32.vlgmr.msra.gmra.mxu0 %vm244_vm1, %v237_v8  ;;  %531 = vmatmul.mubr.msk.f32.vlgmr.msra.gmra.mxu1 %vm244_vm1, %v239_v9 }
  0x16   : > { %332 = vmatprep.mubr.f32.mxu0 %v592_v0  ;;  %344 = vmatprep.mubr.f32.mxu1 %v592_v0 }
  0x17   : > { %394 = vperm.xlu1 %566, %v384_v10   ;;  %389 = vperm.xlu0 %565, %v383_v11  }
  0x19   : > { %530 = vmatmul.mubr.msk.f32.gmra.mxu0 %vm244_vm1, %v238_v12  ;;  %532 = vmatmul.mubr.msk.f32.gmra.mxu1 %vm244_vm1, %v240_v13 }
  0x1b   : > { %404 = vperm.xlu1 %566, %v386_v14   ;;  %399 = vperm.xlu0 %565, %v385_v15  }
  0x8a   : > { %v358_v16 = vpop.permute.xlu0 %357  ;;  %v368_v17 = vpop.permute.xlu1 %367 }
  0x8e   : > { %v363_v18 = vpop.permute.xlu0 %362  ;;  %v373_v19 = vpop.permute.xlu1 %372 }
  0x92   : > { %v390_v20 = vpop.permute.xlu0 %389  ;;  %v395_v23 = vpop.permute.xlu1 %394 }
  0x96   : > { %v400_v24 = vpop.permute.xlu0 %399  ;;  %v405_v43 = vpop.permute.xlu1 %404 }
  0xd5   : > { %v328_v21 = vpop.f32.mrf.mxu0  ;;  %v340_v22 = vpop.f32.mrf.mxu1 }
  0xd6   : > { %v375_v25 = vmul.f32 %v358_v16, %v328_v21  ;;  %v379_v26 = vmul.f32 %v368_v17, %v340_v22 }
  0xd7   : > { %v330_v27 = vpop.f32.mrf.mxu0  ;;  %v342_v28 = vpop.f32.mrf.mxu1 }
  0xd8   : > { %v407_v29 = vadd.f32 %v390_v20, %v375_v25  ;;  %v411_v30 = vadd.f32 %v400_v24, %v379_v26  ;;  %v376_v31 = vmul.f32 %v358_v16, %v330_v27  ;;  %v380_v32 = vmul.f32 %v368_v17, %v342_v28 }
  0xd9   : > { %v334_v33 = vpop.f32.mrf.mxu0  ;;  %v346_v34 = vpop.f32.mrf.mxu1 }
  0xda   : > { %v415_v35 = vmax.f32 %v407_v29, 0.0  ;;  %v419_v36 = vmax.f32 %v411_v30, 0.0  ;;  %v408_v37 = vadd.f32 %v390_v20, %v376_v31  ;;  %v412_v38 = vadd.f32 %v400_v24, %v380_v32 }
  0xdb   : > { %v377_v39 = vmul.f32 %v363_v18, %v334_v33  ;;  %v381_v40 = vmul.f32 %v373_v19, %v346_v34  ;;  %v336_v41 = vpop.f32.mrf.mxu0  ;;  %v348_v42 = vpop.f32.mrf.mxu1 }
  0xdc   : > { %423 = vst [vmem:[%s687_s28] sm:$0xff] %v415_v35  ;;  %427 = vst [vmem:[%s687_s28 + $0x20] sm:$0xff] %v419_v36  ;;  %v416_v44 = vmax.f32 %v408_v37, 0.0  ;;  %v420_v45 = vmax.f32 %v412_v38, 0.0  ;;  %v378_v46 = vmul.f32 %v363_v18, %v336_v41  ;;  %v382_v47 = vmul.f32 %v373_v19, %v348_v42 }
  0xdd   : > { %v409_v48 = vadd.f32 %v395_v23, %v377_v39  ;;  %v413_v49 = vadd.f32 %v405_v43, %v381_v40 }
  0xde   : > { %424 = vst [vmem:[%s687_s28 + $0x8] sm:$0xff] %v416_v44  ;;  %428 = vst [vmem:[%s687_s28 + $0x28] sm:$0xff] %v420_v45  ;;  %v410_v50 = vadd.f32 %v395_v23, %v378_v46  ;;  %v414_v51 = vadd.f32 %v405_v43, %v382_v47 }
  0xdf   : > { %v417_v52 = vmax.f32 %v409_v48, 0.0  ;;  %v421_v53 = vmax.f32 %v413_v49, 0.0 }
  0xe0   : > { %v418_v54 = vmax.f32 %v410_v50, 0.0  ;;  %v422_v55 = vmax.f32 %v414_v51, 0.0 }
  0xe1   : > { %425 = vst [vmem:[%s687_s28 + $0x10] sm:$0xff] %v417_v52  ;;  %429 = vst [vmem:[%s687_s28 + $0x30] sm:$0xff] %v421_v53 }
  0xe2   : > { %426 = vst [vmem:[%s687_s28 + $0x18] sm:$0xff] %v418_v54  ;;  %430 = vst [vmem:[%s687_s28 + $0x38] sm:$0xff] %v422_v55 }
  0xe3 PF: > { %s14_s17 = sadd.s32 1, %s590_s17   ;;  %s711_s15 = smov %s586_s16 }
  0xe4   : > { %p11_p5 = scmp.ge.s32.totalorder %s14_s17, 4   ;;  %s712_s16 = smov %s714_s18 }
  0xe6   :  { %13 = sbr.rel (!%p11_p5) target bundleno = 2 (0x2), region = 66 }

// kernel: conv_t_bn_relu.2
= control target key start
LH: loop header
LB: loop body
LE: loop exit
PB: predicated region body
PF: predicated region fallthrough
CT: control target
= control target key end

     0   :  { %s613_s12 = smov 0   ;;  %s615_s13 = smov 0   ;;  %s665_s0 = inlined_call_operand.vmem [shape: f32[2,4,256], index: 0, kind: input, shape index: {}]   ;;  %s666_s1 = inlined_call_operand.vmem [shape: f32[32,4], index: 1, kind: input, shape index: {}]   ;;  %s667_s2 = inlined_call_operand.vmem [shape: f32[2,32,128], index: 2, kind: output, shape index: {0}]   ;;  %s668_s3 = inlined_call_operand.vmem [shape: f32[2,32,128], index: 3, kind: output, shape index: {1}]  }
   0x1   :  { %s617_s14 = smov 0  }
   0x2 LB: > { %s26_s15 = sadd.s32 1, %s586_s13  ;;  %p522_p0 = scmp.ge.s32.totalorder %s590_s14, 1  ;;  %s590_s14 = sphi %s617_s14, %s14_s14   ;;  %s586_s13 = sphi %s615_s13, %s670_s13   ;;  %s582_s12 = sphi %s613_s12, %s669_s12  }
   0x3   : > { %p28_p1 = scmp.ge.s32.totalorder %s26_s15, 2  ;;  %p159_p2 = scmp.lt.s32.totalorder %s590_s14, 3 }
   0x5   : > { %s672_s15 = smov (%p28_p1, %s26_s15), 0  ;;  %p160_p3 = pnand %p522_p0, %p159_p2 }
   0x6   : > { %p193_p4 = scmp.lt.s32.totalorder (!%p160_p3), %s582_s12, 1 }
   0x7   : > { %163 = sbr.rel (%p160_p3) target bundleno = 232 (0xe8), region = 28 }
   0xc   : > { %v592_v0 = vmov 0.0   ;;  %s674_s12 = smov (!%p193_p4, %s582_s12), 1  ;;  %vm244_vm0 = vcmask 1043456   ;;  %v224_v3 = vld [vmem:[%s666_s1] sm:$0xff]  ;;  %vm231_vm1 = vcmask 31744   ;;  %v226_v4 = vld [vmem:[%s666_s1 + $0x10] sm:$0xff] }
   0xd   : > { %313 = vmatprep.mubr.f32.mxu0 %v592_v0  ;;  %325 = vmatprep.mubr.f32.mxu1 %v592_v0  ;;  %s537_s16 = sshll.u32 %s674_s12, 3  ;;  %v225_v5 = vld [vmem:[%s666_s1 + $0x8] sm:$0xff]  ;;  %v227_v6 = vld [vmem:[%s666_s1 + $0x18] sm:$0xff]  ;;  %s538_s28 = sshll.u32 %s674_s12, 5 }
   0xe   : > { %s200_s19 = scalar_lea.vmem %s665_s0, %s537_s16  ;;  %s206_s4 = scalar_lea.vmem %s667_s2, %s538_s28 }
   0xf   : > { %v228_v1 = vld [vmem:[%s200_s19] sm:$0xff]  ;;  %s211_s7 = scalar_lea.vmem %s668_s3, %s538_s28 }
  0x10   : > { %v230_v2 = vcombine.high %v228_v1, %v228_v1 }
  0x12   : > { %529 = vmatprep.subr.msk.mxu0 %vm244_vm0, %v230_v2  ;;  %540 = vmatprep.subr.msk.mxu1 %vm244_vm0, %v230_v2 }
  0x13   : > { %530 = vmatpush1.msk.msra.mxu0 %vm244_vm0, %v228_v1  ;;  %541 = vmatpush1.msk.msra.mxu1 %vm244_vm0, %v228_v1 }
  0x14   : > { %531 = vmatmul.mubr.msk.f32.vlgmr.msra.gmra.mxu0 %vm231_vm1, %v224_v3  ;;  %533 = vmatmul.mubr.msk.f32.vlgmr.msra.gmra.mxu1 %vm231_vm1, %v226_v4 }
  0x15   : > { %319 = vmatprep.mubr.f32.mxu0 %v592_v0  ;;  %331 = vmatprep.mubr.f32.mxu1 %v592_v0 }
  0x18   : > { %532 = vmatmul.mubr.msk.f32.gmra.mxu0 %vm231_vm1, %v225_v5  ;;  %534 = vmatmul.mubr.msk.f32.gmra.mxu1 %vm231_vm1, %v227_v6 }
  0xd4   : > { %v315_v7 = vpop.f32.mrf.mxu0  ;;  %v327_v8 = vpop.f32.mrf.mxu1 }
  0xd6   : > { %v317_v9 = vpop.f32.mrf.mxu0  ;;  %v329_v10 = vpop.f32.mrf.mxu1 }
  0xd7   : > { %v338_v11 = vsub.f32 %v317_v9, %v315_v7  ;;  %v340_v12 = vsub.f32 %v329_v10, %v327_v8 }
  0xd8   : > { %v321_v13 = vpop.f32.mrf.mxu0  ;;  %v333_v14 = vpop.f32.mrf.mxu1 }
  0xd9   : > { %v342_v15 = vmul.f32 0.5, %v338_v11  ;;  %v344_v16 = vmul.f32 0.5, %v340_v12 }
  0xda   : > { %v323_v17 = vpop.f32.mrf.mxu0  ;;  %v335_v18 = vpop.f32.mrf.mxu1 }
  0xdb   : > { %v346_v19 = vadd.f32 %v342_v15, %v315_v7  ;;  %v348_v20 = vadd.f32 %v344_v16, %v327_v8  ;;  %v339_v21 = vsub.f32 %v323_v17, %v321_v13  ;;  %v341_v22 = vsub.f32 %v335_v18, %v333_v14 }
  0xdd   : > { %v350_v23 = vsub.f32 %v317_v9, %v346_v19  ;;  %v352_v24 = vsub.f32 %v329_v10, %v348_v20  ;;  %v343_v25 = vmul.f32 0.5, %v339_v21  ;;  %v345_v26 = vmul.f32 0.5, %v341_v22  ;;  %386 = vst [vmem:[%s206_s4] sm:$0xff] %v346_v19  ;;  %388 = vst [vmem:[%s206_s4 + $0x10] sm:$0xff] %v348_v20 }
  0xde   : > { %v398_v28 = vmul.f32 %v346_v19, %v346_v19  ;;  %v400_v30 = vmul.f32 %v348_v20, %v348_v20 }
  0xdf   : > { %v354_v27 = vmul.f32 %v350_v23, %v338_v11  ;;  %v356_v29 = vmul.f32 %v352_v24, %v340_v12  ;;  %v347_v31 = vadd.f32 %v343_v25, %v321_v13  ;;  %v349_v32 = vadd.f32 %v345_v26, %v333_v14 }
  0xe0   : > { %v404_v33 = vmul.f32 0.0, %v398_v28  ;;  %v406_v34 = vmul.f32 0.0, %v400_v30 }
  0xe1   : > { %v351_v35 = vsub.f32 %v323_v17, %v347_v31  ;;  %v353_v36 = vsub.f32 %v335_v18, %v349_v32  ;;  %v399_v40 = vmul.f32 %v347_v31, %v347_v31  ;;  %v401_v42 = vmul.f32 %v349_v32, %v349_v32  ;;  %387 = vst [vmem:[%s206_s4 + $0x8] sm:$0xff] %v347_v31 }
  0xe2   : > { %v408_v37 = vadd.f32 %v404_v33, %v354_v27  ;;  %v410_v38 = vadd.f32 %v406_v34, %v356_v29  ;;  %389 = vst [vmem:[%s206_s4 + $0x18] sm:$0xff] %v349_v32 }
  0xe3   : > { %v355_v39 = vmul.f32 %v351_v35, %v339_v21  ;;  %v357_v41 = vmul.f32 %v353_v36, %v341_v22  ;;  %v405_v43 = vmul.f32 0.0, %v399_v40  ;;  %v407_v44 = vmul.f32 0.0, %v401_v42 }
  0xe4   : > { %412 = vst [vmem:[%s211_s7] sm:$0xff] %v408_v37  ;;  %414 = vst [vmem:[%s211_s7 + $0x10] sm:$0xff] %v410_v38 }
  0xe5   : > { %v409_v45 = vadd.f32 %v405_v43, %v355_v39  ;;  %v411_v46 = vadd.f32 %v407_v44, %v357_v41 }
  0xe7   : > { %413 = vst [vmem:[%s211_s7 + $0x8] sm:$0xff] %v409_v45  ;;  %415 = vst [vmem:[%s211_s7 + $0x18] sm:$0xff] %v411_v46 }
  0xe8 PF: > { %s14_s14 = sadd.s32 1, %s590_s14   ;;  %s669_s12 = smov %s586_s13 }
  0xe9   : > { %p11_p5 = scmp.ge.s32.totalorder %s14_s14, 4   ;;  %s670_s13 = smov %s672_s15 }
  0xeb   :  { %13 = sbr.rel (!%p11_p5) target bundleno = 2 (0x2), region = 74 }

</bundles_post_ra>
